<compile_context>
chip_gen: v6e
topology: v6e:2x2x1
jax: 0.10.0
libtpu: 0.0.40
codegen_flags: <defaults>
</compile_context>

<pallas_src>
import functools

import jax
import jax.numpy as jnp
from jax import lax
from jax.experimental import pallas as pl
from jax.experimental.pallas import tpu as pltpu

EPS = 1e-5
EPS_RAW = EPS * 255.0 * 255.0   # eps folded onto raw-pixel-scale variance
MIB = 1024 * 1024


# ----------------------------------------------------------------------------
# Full-row path: one block holds whole (n, c) instances (rows of the slab).
# ----------------------------------------------------------------------------
def _standardize_kernel(x_ref, o_ref):
    # x_ref: (tile_nc, HW) raw pixel block (uint8 or any real dtype).
    # o_ref: (tile_nc, HW) float32 block.
    inv_hw = 1.0 / x_ref.shape[-1]
    # Pass 1: per-instance mean of raw pixels (cast fused into the reduction).
    mean = jnp.sum(x_ref[...].astype(jnp.float32), axis=-1, keepdims=True) * inv_hw
    # Pass 2: biased variance, centered two-pass form (robust to cancellation).
    d = x_ref[...].astype(jnp.float32) - mean
    var = jnp.sum(d * d, axis=-1, keepdims=True) * inv_hw
    scale = lax.rsqrt(var + EPS_RAW)
    # Pass 3: normalize + store; re-read the uint8 block instead of keeping a
    # full-size f32 copy live across passes.
    o_ref[...] = (x_ref[...].astype(jnp.float32) - mean) * scale


def _standardize_fullrow(x2d, tile_nc, vmem_limit):
    NC, HW = x2d.shape
    grid = (pl.cdiv(NC, tile_nc),)
    in_bytes = NC * HW * x2d.dtype.itemsize
    out_bytes = NC * HW * 4
    return pl.pallas_call(
        _standardize_kernel,
        out_shape=jax.ShapeDtypeStruct((NC, HW), jnp.float32),
        grid_spec=pltpu.PrefetchScalarGridSpec(
            num_scalar_prefetch=0,
            grid=grid,
            in_specs=[pl.BlockSpec((tile_nc, HW), lambda i: (i, 0))],
            out_specs=pl.BlockSpec((tile_nc, HW), lambda i: (i, 0)),
        ),
        compiler_params=pltpu.CompilerParams(
            dimension_semantics=("parallel",),   # lets both v7x TCs take rows
            vmem_limit_bytes=vmem_limit,
        ),
        cost_estimate=pl.CostEstimate(
            flops=7 * NC * HW,
            transcendentals=NC,
            bytes_accessed=in_bytes + out_bytes,
        ),
    )(x2d)


# ----------------------------------------------------------------------------
# Spatially-chunked fallback path for large H*W planes.
# ----------------------------------------------------------------------------
def _stats_kernel(x_ref, mean_ref, rstd_ref, sum_sc, sumsq_sc, *, hw, tile_hw):
    k = pl.program_id(1)

    @pl.when(k == 0)
    def _init():
        sum_sc[...] = jnp.zeros_like(sum_sc)
        sumsq_sc[...] = jnp.zeros_like(sumsq_sc)

    # Shift by 128 to reduce cancellation in the E[x^2]-E[x]^2 form.
    x = x_ref[...].astype(jnp.float32) - 128.0
    if hw % tile_hw != 0:
        # Mask the padded lanes of the partial last HW chunk.
        pos = k * tile_hw + lax.broadcasted_iota(jnp.int32, x_ref.shape, 1)
        x = jnp.where(pos < hw, x, 0.0)
    sum_sc[...] += jnp.sum(x, axis=-1, keepdims=True)
    sumsq_sc[...] += jnp.sum(x * x, axis=-1, keepdims=True)

    @pl.when(k == pl.num_programs(1) - 1)
    def _finalize():
        inv_hw = 1.0 / hw
        m = sum_sc[...] * inv_hw
        var = jnp.maximum(sumsq_sc[...] * inv_hw - m * m, 0.0)
        mean_ref[...] = m + 128.0
        rstd_ref[...] = lax.rsqrt(var + EPS_RAW)


def _normalize_kernel(mean_ref, rstd_ref, x_ref, o_ref):
    o_ref[...] = (x_ref[...].astype(jnp.float32) - mean_ref[...]) * rstd_ref[...]


def _standardize_chunked(x2d, tile_nc, tile_hw, vmem_limit):
    NC, HW = x2d.shape
    grid = (pl.cdiv(NC, tile_nc), pl.cdiv(HW, tile_hw))
    in_bytes = NC * HW * x2d.dtype.itemsize
    out_bytes = NC * HW * 4

    # Kernel A: per-instance mean / rstd via chunk-accumulated sum & sum-sq.
    stats = functools.partial(_stats_kernel, hw=HW, tile_hw=tile_hw)
    mean, rstd = pl.pallas_call(
        stats,
        out_shape=(jax.ShapeDtypeStruct((NC, 1), jnp.float32),
                   jax.ShapeDtypeStruct((NC, 1), jnp.float32)),
        grid_spec=pltpu.PrefetchScalarGridSpec(
            num_scalar_prefetch=0,
            grid=grid,
            in_specs=[pl.BlockSpec((tile_nc, tile_hw), lambda i, k: (i, k))],
            out_specs=[pl.BlockSpec((tile_nc, 1), lambda i, k: (i, 0)),
                       pl.BlockSpec((tile_nc, 1), lambda i, k: (i, 0))],
            scratch_shapes=[pltpu.VMEM((tile_nc, 1), jnp.float32),
                            pltpu.VMEM((tile_nc, 1), jnp.float32)],
        ),
        compiler_params=pltpu.CompilerParams(
            dimension_semantics=("parallel", "arbitrary"),
            vmem_limit_bytes=vmem_limit,
        ),
        cost_estimate=pl.CostEstimate(
            flops=5 * NC * HW, transcendentals=NC, bytes_accessed=in_bytes),
    )(x2d)

    # Kernel B: chunk-wise normalize + store using the per-instance stats.
    return pl.pallas_call(
        _normalize_kernel,
        out_shape=jax.ShapeDtypeStruct((NC, HW), jnp.float32),
        grid_spec=pltpu.PrefetchScalarGridSpec(
            num_scalar_prefetch=0,
            grid=grid,
            in_specs=[pl.BlockSpec((tile_nc, 1), lambda i, k: (i, 0)),
                      pl.BlockSpec((tile_nc, 1), lambda i, k: (i, 0)),
                      pl.BlockSpec((tile_nc, tile_hw), lambda i, k: (i, k))],
            out_specs=pl.BlockSpec((tile_nc, tile_hw), lambda i, k: (i, k)),
        ),
        compiler_params=pltpu.CompilerParams(
            dimension_semantics=("parallel", "parallel"),
            vmem_limit_bytes=vmem_limit,
        ),
        cost_estimate=pl.CostEstimate(
            flops=3 * NC * HW, transcendentals=0,
            bytes_accessed=in_bytes + out_bytes),
    )(mean, rstd, x2d)


# ----------------------------------------------------------------------------
# Block sizing / dispatch.
# ----------------------------------------------------------------------------
def _chip_params():
    """(target_out_block_bytes, vmem_limit_bytes) per TPU generation."""
    try:
        kind = jax.devices()[0].device_kind.lower()
    except Exception:
        kind = ""
    if "v2" in kind or "v3" in kind:
        return 4 * MIB, None          # old chips: keep the default scoped limit
    if "v5" in kind:                  # v5e: ~0.82 TB/s HBM -> 4 MiB is ~roofline;
        return 4 * MIB, 32 * MIB      # scoped default is 16 MiB, so 32 MiB is load-bearing
    if "v6" in kind:                  # v6e: 128 MiB VMEM, ~1.4 TB/s HBM
        return 8 * MIB, 64 * MIB
    # v7x (and unknown/future): only 64 MiB VMEM but 3.2 TB/s HBM -> bigger
    # blocks keep the ~0.35 us/step overhead small without overcommitting.
    return 12 * MIB, 48 * MIB


def _pick_tile_nc(nc, hw, target_out_bytes):
    """Rows (instances) per block for the full-row kernel.

    VMEM footprint of that kernel is ~2*(in_u8 + out_f32) blocks (no f32
    temps are kept live), so sizing the f32 output block to `target_out_bytes`
    keeps us well inside the per-chip limit. Returns 0 if even a minimal
    32-row block would blow the budget (-> spatially-chunked fallback).
    """
    rows = target_out_bytes // (hw * 4)
    if rows >= nc:
        # Whole slab fits in one block; still split in two (when legal as
        # 32-row multiples) so both v7x TensorCores get work.
        if nc >= 64:
            half = ((-(-nc // 2)) + 31) // 32 * 32
            if half < nc:
                return half
        return nc
    if rows < 32:
        return 0
    return (rows // 32) * 32


def _pick_fallback_tiles(nc, hw, target_out_bytes):
    tile_nc = nc if nc <= 32 else 32
    tile_hw = max(128, (target_out_bytes // (tile_nc * 4)) // 128 * 128)
    tile_hw = min(tile_hw, hw)
    return tile_nc, tile_hw


def self_standardize(pixels):
    """pixels: (N, C, H, W) uint8 (or any real dtype) with values in [0, 255].

    Returns float32 (N, C, H, W) == InstanceNorm2d(pixels.float() / 255).
    """
    N, C, H, W = pixels.shape
    NC, HW = N * C, H * W
    x2d = pixels.reshape(NC, HW)          # lane-dense slab; free reshape

    target_out_bytes, vmem_limit = _chip_params()
    tile_nc = _pick_tile_nc(NC, HW, target_out_bytes)
    if tile_nc == 0:
        # Large planes: per-instance rows don't fit a block -> chunk HW.
        t_nc, t_hw = _pick_fallback_tiles(NC, HW, target_out_bytes)
        out2d = _standardize_chunked(x2d, t_nc, t_hw, vmem_limit)
    else:
        out2d = _standardize_fullrow(x2d, tile_nc, vmem_limit)
    return out2d.reshape(N, C, H, W)


def _reference(pixels):
    x = pixels.astype(jnp.float32) / 255.0
    mean = jnp.mean(x, axis=(2, 3), keepdims=True)
    var = jnp.mean((x - mean) ** 2, axis=(2, 3), keepdims=True)
    return (x - mean) / jnp.sqrt(var + EPS)


if __name__ == "__main__":
    # Main (full-row) path.
    key = jax.random.PRNGKey(0)
    N, C, H, W = 2, 4, 16, 16
    pixels = jax.random.randint(key, (N, C, H, W), 0, 256, dtype=jnp.int32)
    pixels = pixels.astype(jnp.uint8)

    out = jax.block_until_ready(self_standardize(pixels))
    ref = _reference(pixels)
    assert out.shape == (N, C, H, W)
    assert out.dtype == jnp.float32
    assert jnp.allclose(out, ref, atol=1e-4, rtol=1e-4), float(
        jnp.max(jnp.abs(out - ref)))

    # Spatially-chunked fallback path (used for large H*W planes), exercised
    # here with small forced tiles including a partial last HW chunk.
    key2 = jax.random.PRNGKey(1)
    N2, C2, H2, W2 = 2, 4, 16, 24
    pix2 = jax.random.randint(key2, (N2, C2, H2, W2), 0, 256, dtype=jnp.int32)
    pix2 = pix2.astype(jnp.uint8)
    out2 = _standardize_chunked(pix2.reshape(N2 * C2, H2 * W2),
                                tile_nc=8, tile_hw=256, vmem_limit=32 * MIB)
    out2 = jax.block_until_ready(out2).reshape(N2, C2, H2, W2)
    ref2 = _reference(pix2)
    assert jnp.allclose(out2, ref2, atol=1e-3, rtol=1e-3), float(
        jnp.max(jnp.abs(out2 - ref2)))

    print("KERNEL_OK")
</pallas_src>

<mosaic_0001>
module attributes {stable_mosaic.version = 11 : i64} {
  func.func @_standardize_kernel(%arg0: i32, %arg1: memref<8x256xi8, #tpu.memory_space<vmem>>, %arg2: memref<8x256xf32, #tpu.memory_space<vmem>>) attributes {dimension_semantics = [#tpu.dimension_semantics<parallel>], iteration_bounds = array<i64: 1>, scalar_prefetch = 0 : i64, scratch_operands = 0 : i64, tpu.core_type = #tpu.core_type<tc>, window_params = [{transform_indices = @transform_0, window_bounds = array<i64: 8, 256>}, {transform_indices = @transform_1, window_bounds = array<i64: 8, 256>}]} {
    %c0 = arith.constant 0 : index
    %c0_0 = arith.constant 0 : index
    %0 = vector.load %arg1[%c0, %c0_0] : memref<8x256xi8, #tpu.memory_space<vmem>>, vector<8x256xi8>
    %1 = arith.uitofp %0 : vector<8x256xi8> to vector<8x256xf32>
    %cst = arith.constant dense<0.000000e+00> : vector<8xf32>
    %2 = vector.multi_reduction <add>, %1, %cst [1] : vector<8x256xf32> to vector<8xf32>
    %3 = vector.shape_cast %2 : vector<8xf32> to vector<8x1xf32>
    %cst_1 = arith.constant 3.906250e-03 : f32
    %4 = vector.broadcast %cst_1 : f32 to vector<8x1xf32>
    %5 = arith.mulf %3, %4 : vector<8x1xf32>
    %c0_2 = arith.constant 0 : index
    %c0_3 = arith.constant 0 : index
    %6 = vector.load %arg1[%c0_2, %c0_3] : memref<8x256xi8, #tpu.memory_space<vmem>>, vector<8x256xi8>
    %7 = arith.uitofp %6 : vector<8x256xi8> to vector<8x256xf32>
    %8 = vector.broadcast %5 : vector<8x1xf32> to vector<8x256xf32>
    %9 = arith.subf %7, %8 : vector<8x256xf32>
    %10 = arith.mulf %9, %9 : vector<8x256xf32>
    %cst_4 = arith.constant dense<0.000000e+00> : vector<8xf32>
    %11 = vector.multi_reduction <add>, %10, %cst_4 [1] : vector<8x256xf32> to vector<8xf32>
    %12 = vector.shape_cast %11 : vector<8xf32> to vector<8x1xf32>
    %cst_5 = arith.constant 3.906250e-03 : f32
    %13 = vector.broadcast %cst_5 : f32 to vector<8x1xf32>
    %14 = arith.mulf %12, %13 : vector<8x1xf32>
    %cst_6 = arith.constant 6.502500e-01 : f32
    %15 = vector.broadcast %cst_6 : f32 to vector<8x1xf32>
    %16 = arith.addf %14, %15 : vector<8x1xf32>
    %17 = math.rsqrt %16 : vector<8x1xf32>
    %c0_7 = arith.constant 0 : index
    %c0_8 = arith.constant 0 : index
    %18 = vector.load %arg1[%c0_7, %c0_8] : memref<8x256xi8, #tpu.memory_space<vmem>>, vector<8x256xi8>
    %19 = arith.uitofp %18 : vector<8x256xi8> to vector<8x256xf32>
    %20 = vector.broadcast %5 : vector<8x1xf32> to vector<8x256xf32>
    %21 = arith.subf %19, %20 : vector<8x256xf32>
    %22 = vector.broadcast %17 : vector<8x1xf32> to vector<8x256xf32>
    %23 = arith.mulf %21, %22 : vector<8x256xf32>
    %c0_9 = arith.constant 0 : index
    %c0_10 = arith.constant 0 : index
    %24 = vector.load %arg2[%c0_9, %c0_10] : memref<8x256xf32, #tpu.memory_space<vmem>>, vector<8x256xf32>
    tpu.vector_store %arg2[%c0_9, %c0_10], %23 {strides = array<i32>} : memref<8x256xf32, #tpu.memory_space<vmem>>, vector<8x256xf32>,
    return
  }
  func.func @transform_0(%arg0: i32) -> (i32, i32) {
    %c0_i32 = arith.constant 0 : i32
    %c0_i32_0 = arith.constant 0 : i32
    return %arg0, %c0_i32 : i32, i32
  }
  func.func @transform_1(%arg0: i32) -> (i32, i32) {
    %c0_i32 = arith.constant 0 : i32
    %c0_i32_0 = arith.constant 0 : i32
    return %arg0, %c0_i32 : i32, i32
  }
}

</mosaic_0001>

<bundles_post_ra>
// kernel: tpu_custom_call.1
= control target key start
LH: loop header
LB: loop body
LE: loop exit
PB: predicated region body
PF: predicated region fallthrough
CT: control target
= control target key end

     0   :  { %6 = vsyncpa [#allocation3], 0  ;;  %s127_s0 = inlined_call_operand.hbm [shape: u8[8,256], index: 0, kind: input, shape index: {}]   ;;  %s128_s1 = inlined_call_operand.hbm [shape: f32[8,256], index: 1, kind: output, shape index: {}]  }
   0x1   :  { %7 = vsyncpa [#allocation4], 0  ;;  %s109_s6 = smov [#allocation2]  }
   0x2   :  { %s14_s7 = sshll.u32 %s109_s6, 4  ;;  %s15_s7 = int_to_ptr.vmem [resolvable:$true] %s14_s7 }
   0x3   :  { %s73_s8 = scalar_lea.vmem %s15_s7, 64  ;;  %p78_p1 = scmp.lt.s32.totalorder %s15_s7, %s15_s7 }
   0x4   :  { %p74_p0 = scmp.ne.s32.totalorder %s15_s7, %s73_s8  ;;  %p79_p2 = scmp.lt.s32.totalorder %s73_s8, %s73_s8 }
   0x6   :  { %p80_p3 = por %p79_p2, %p78_p1 }
   0x8   :  { %p81_p4 = pnand %p80_p3, %p74_p0 }
   0xa   :  { %84 = shalt.err (!%p81_p4)
}
   0xb   :  { %17 = dma.hbm_to_vmem [thread:$0]  %s127_s0, 64, %s15_s7, [#allocation3]  }
   0xc   :  { %105 = dma.done.wait [#allocation3], 64  }
   0xd   :  { %106 = vsyncadd [#allocation3], 4294967232  ;;  %v21_v0 = vld [vmem:[#allocation2] sm:$0xf]  ;;  %s110_s0 = smov [#allocation5]  }
   0xe   :  { %v22_v1 = vunpack.c.0.s8 %v21_v0  ;;  %v23_v2 = vunpack.c.1.s8 %v21_v0  ;;  %s52_s11 = sshll.u32 %s110_s0, 4  ;;  %s53_s11 = int_to_ptr.vmem [resolvable:$true] %s52_s11 }
   0xf   :  { %s85_s12 = scalar_lea.vmem %s53_s11, 256  ;;  %p90_p6 = scmp.lt.s32.totalorder %s53_s11, %s53_s11 }
  0x10   :  { %v24_v3 = vand.u32 255, %v22_v1  ;;  %v25_v4 = vand.u32 255, %v23_v2  ;;  %p86_p5 = scmp.ne.s32.totalorder %s53_s11, %s85_s12  ;;  %p91_p7 = scmp.lt.s32.totalorder %s85_s12, %s85_s12 }
  0x12   :  { %v26_v5 = vcvt.s32.f32 %v24_v3  ;;  %v27_v6 = vcvt.s32.f32 %v25_v4  ;;  %p92_p8 = por %p91_p7, %p90_p6 }
  0x14   :  { %v28_v7 = vadd.f32 %v27_v6, %v26_v5  ;;  %p93_p9 = pnand %p92_p8, %p86_p5 }
  0x16   :  { %29 = vadd.xlane.f32.xlu0 %v28_v7 }
  0x9f   :  { %v30_v8 = vpop.xlane.xlu0 %29 }
  0xa0   :  { %v31_v9 = vmul.f32 0.00390625, %v30_v8 }
  0xa2   :  { %v32_v10 = vsub.f32 %v26_v5, %v31_v9  ;;  %v33_v11 = vsub.f32 %v27_v6, %v31_v9 }
  0xa4   :  { %v34_v12 = vmul.f32 %v32_v10, %v32_v10  ;;  %v35_v13 = vmul.f32 %v33_v11, %v33_v11 }
  0xa6   :  { %v36_v14 = vadd.f32 %v35_v13, %v34_v12 }
  0xa8   :  { %37 = vadd.xlane.f32.xlu0 %v36_v14 }
 0x131   :  { %v38_v15 = vpop.xlane.xlu0 %37 }
 0x132   :  { %v39_v16 = vmul.f32 0.00390625, %v38_v15 }
 0x134   :  { %v40_v17 = vadd.f32 0.65025, %v39_v16 }
 0x136   :  { %63 = vrsqrt.f32 %v40_v17 }
 0x143   :  { %v64_v18 = vpop.eup %63 }
 0x144   :  { %v42_v19 = vmul.f32 %v64_v18, %v32_v10  ;;  %v43_v20 = vmul.f32 %v64_v18, %v33_v11 }
 0x146   :  { %44 = vst [vmem:[#allocation5] sm:$0xff] %v42_v19  ;;  %45 = vst [vmem:[#allocation5 + $0x8] sm:$0xff] %v43_v20 }
 0x147   :  { %96 = shalt.err (!%p93_p9)
}
 0x148   :  { %55 = dma.vmem_to_hbm [thread:$0]  %s53_s11, 256, %s128_s1, [#allocation4]  }
 0x149   :  { %107 = dma.done.wait [#allocation4], 256  }
 0x14a   :  { %108 = vsyncadd [#allocation4], 4294967040 }
 0x14b   :  { %59 = vsyncpa [#allocation3], 1 }
 0x14c   :  { %60 = vsyncpa [#allocation4], 1 }

</bundles_post_ra>
